<compile_context>
chip_gen: v6e
topology: v6e:2x2x1
jax: 0.10.0
libtpu: 0.0.40
codegen_flags: <defaults>
</compile_context>

<pallas_src>
import numpy as np
import jax
import jax.numpy as jnp
from jax import lax
from jax.experimental import pallas as pl

# -------- small synthetic sizes consistent with the forward --------
B = 2          # batch
S = 16         # sequence length
H = 32         # hidden_size
MID = 32       # mid_size
L = 5          # label_num
V = 64         # surrogate vocab size
FF = 4 * H     # FFN inner width
MAX_R = 2      # max relations per batch element (padding bound)


def _round_up(x, m):
    return ((x + m - 1) // m) * m


QKV_PAD = _round_up(3 * H, 128)   # lane-dense fused-QKV output width (96 -> 128)


def _ln(x, g, b, eps=1e-12):
    mu = jnp.mean(x, axis=-1, keepdims=True)
    var = jnp.mean((x - mu) ** 2, axis=-1, keepdims=True)
    return (x - mu) * lax.rsqrt(var + eps) * g + b


# --------------------- fused Pallas kernel (single step) ---------------------
def fused_marker_re_kernel(x_ref, bias_ref,
                           wqkv_ref, bqkv_ref, wo_ref, bo_ref,
                           ln1g_ref, ln1b_ref, w1_ref, b1_ref, w2_ref, b2_ref,
                           ln2g_ref, ln2b_ref,
                           idxa_ref, idxb_ref, lab_ref, valid_ref,
                           tw1_ref, tb1_ref, tw2_ref, tb2_ref,
                           loss_ref, pred_ref):
    f32 = jnp.float32
    bf16 = jnp.bfloat16

    x = x_ref[...]                                   # (B*S, H) f32
    bs, h = x.shape

    # ---------------- encoder layer (BertModel surrogate) ----------------
    # QKV projection over the whole batch slab; weight lane-padded to 128 cols.
    qkv = jnp.dot(x.astype(bf16), wqkv_ref[...],
                  preferred_element_type=f32) + bqkv_ref[...]      # (B*S, 128)
    q = qkv[:, :h]
    k = qkv[:, h:2 * h]
    v = qkv[:, 2 * h:3 * h]

    # per-batch attention via a block-diagonal additive bias (also carries the
    # padding mask); one 2-D matmul instead of per-batch grid steps.
    scores = lax.dot_general(q.astype(bf16), k.astype(bf16),
                             (((1,), (1,)), ((), ())),
                             preferred_element_type=f32)           # (B*S, B*S)
    scores = scores * (1.0 / float(np.sqrt(h))) + bias_ref[...]
    m = jnp.max(scores, axis=-1, keepdims=True)
    p = jnp.exp(scores - m)
    p = p * pl.reciprocal(jnp.sum(p, axis=-1, keepdims=True), approx=True)
    ctx = jnp.dot(p.astype(bf16), v.astype(bf16), preferred_element_type=f32)

    attn = jnp.dot(ctx.astype(bf16), wo_ref[...],
                   preferred_element_type=f32) + bo_ref[...]
    h1 = _ln(x + attn, ln1g_ref[...], ln1b_ref[...])

    ff = jnp.maximum(jnp.dot(h1.astype(bf16), w1_ref[...],
                             preferred_element_type=f32) + b1_ref[...], 0.0)
    ff = jnp.dot(ff.astype(bf16), w2_ref[...],
                 preferred_element_type=f32) + b2_ref[...]
    enc = _ln(h1 + ff, ln2g_ref[...], ln2b_ref[...])               # (B*S, H) f32

    # -------------- marker gather (one-hot MXU matmul, on device) --------------
    n_pad = idxa_ref.shape[0]
    row_iota = lax.broadcasted_iota(jnp.int32, (n_pad, bs), 1)
    sel_a = (row_iota == idxa_ref[...]).astype(bf16)               # (n_pad, B*S)
    sel_b = (row_iota == idxb_ref[...]).astype(bf16)
    enc_b = enc.astype(bf16)
    marker = jnp.concatenate(
        [jnp.dot(sel_a, enc_b, preferred_element_type=f32),
         jnp.dot(sel_b, enc_b, preferred_element_type=f32)], axis=-1)  # (n_pad, 2H)

    # -------------------- hidden2tag MLP + CE + argmax --------------------
    hmid = jnp.maximum(jnp.dot(marker.astype(bf16), tw1_ref[...],
                               preferred_element_type=f32) + tb1_ref[...], 0.0)
    logits = jnp.dot(hmid.astype(bf16), tw2_ref[...],
                     preferred_element_type=f32) + tb2_ref[...]    # (n_pad, L)
    nl = logits.shape[-1]

    valid = valid_ref[...]                                         # (n_pad, 1)
    mx = jnp.max(logits, axis=-1, keepdims=True)
    lse = mx + jnp.log(jnp.sum(jnp.exp(logits - mx), axis=-1, keepdims=True))
    lab_iota = lax.broadcasted_iota(jnp.int32, (n_pad, nl), 1)
    picked = jnp.sum(jnp.where(lab_iota == lab_ref[...], logits, 0.0),
                     axis=-1, keepdims=True)
    per_ex = (lse - picked) * valid
    # mean over the *valid* relations only (exactly matches reference CE mean).
    loss_ref[...] = (jnp.sum(per_ex, axis=0, keepdims=True)
                     / jnp.sum(valid, axis=0, keepdims=True))

    # argmax (first maximal index), emitted lane-major as (1, n_pad).
    idx = jnp.min(jnp.where(logits == mx, lab_iota.astype(f32), float(nl)),
                  axis=-1, keepdims=True)                          # (n_pad, 1)
    eye = (lax.broadcasted_iota(jnp.int32, (n_pad, n_pad), 0)
           == lax.broadcasted_iota(jnp.int32, (n_pad, n_pad), 1)).astype(f32)
    pred_row = lax.dot_general(idx, eye, (((0,), (0,)), ((), ())),
                               preferred_element_type=f32)         # (1, n_pad)
    pred_ref[...] = pred_row.astype(jnp.int32)


# ------------------------------ jitted core ------------------------------
def _forward_core(params, ins_tensor, rels, rels_pos, pos_en, padding_mask,
                  token_type_ids):
    bn, sn = ins_tensor.shape
    hn = params["word_emb"].shape[1]
    max_r = rels.shape[1]
    n_pad = bn * max_r

    # embedding gathers + embedding LayerNorm stay in plain JAX (glue, fused by XLA).
    emb = (params["word_emb"][ins_tensor]
           + params["pos_emb"][pos_en]
           + params["type_emb"][token_type_ids])
    emb = _ln(emb, params["emb_ln_g"], params["emb_ln_b"])
    x = emb.reshape(bn * sn, hn).astype(jnp.float32)

    # block-diagonal attention bias: attend only within the same batch element
    # and only to non-padded keys (additive -1e9 elsewhere).
    batch_ids = jnp.repeat(jnp.arange(bn), sn)
    same = batch_ids[:, None] == batch_ids[None, :]
    key_keep = padding_mask.reshape(-1) > 0
    attn_bias = jnp.where(same & key_keep[None, :], 0.0, -1e9).astype(jnp.float32)

    # padded marker-gather indices / labels / validity mask -- all on device,
    # fully vectorized (replaces the host python per-relation loop).
    start = rels_pos[:, 0:1]                          # (B, 1)
    num = rels_pos[:, 1:2]                            # (B, 1)
    slot = jnp.arange(max_r)[None, :]                 # (1, MAX_R)
    valid = (slot < num).astype(jnp.float32).reshape(n_pad, 1)
    col_a = start + 4 * slot
    col_b = col_a + 2
    boff = (jnp.arange(bn) * sn)[:, None]
    idx_a = jnp.clip(boff + col_a, 0, bn * sn - 1).astype(jnp.int32).reshape(n_pad, 1)
    idx_b = jnp.clip(boff + col_b, 0, bn * sn - 1).astype(jnp.int32).reshape(n_pad, 1)
    labels = rels.astype(jnp.int32).reshape(n_pad, 1)

    args = (x, attn_bias,
            params["wqkv"], params["bqkv"], params["wo"], params["bo"],
            params["ln1g"], params["ln1b"], params["w1"], params["b1"],
            params["w2"], params["b2"], params["ln2g"], params["ln2b"],
            idx_a, idx_b, labels, valid,
            params["t_w1"], params["t_b1"], params["t_w2"], params["t_b2"])

    loss, pred = pl.pallas_call(
        fused_marker_re_kernel,
        out_shape=(jax.ShapeDtypeStruct((1, 1), jnp.float32),
                   jax.ShapeDtypeStruct((1, n_pad), jnp.int32)),
    )(*args)

    # on-device compaction: valid relations first, preserving reference order.
    valid_flat = valid.reshape(-1)
    order = jnp.argsort(1.0 - valid_flat)             # stable -> valid slots first
    pred_c = pred.reshape(-1)[order]
    label_c = labels.reshape(-1)[order]
    return loss[0, 0], pred_c, label_c


_forward_jit = jax.jit(_forward_core)


# ------------------------------ public forward ------------------------------
def marker_re_forward(params, ins_tensor, rels, rels_pos, pos_en, padding_mask,
                      token_type_ids, attention_mask, test=False):
    # encoder_attention_mask is ignored by BertModel when it is not a decoder.
    del attention_mask
    loss, pred, label_vec = _forward_jit(
        params, ins_tensor, rels, rels_pos, pos_en, padding_mask, token_type_ids)
    # TODO(synk): pred/label_vec are padded to B*MAX_R (valid relations first);
    # variable-length outputs are not expressible without a host sync -- the CE
    # loss is an exact masked mean over the valid relations only.
    if test:
        num = np.asarray(rels_pos[:, 1])              # host lists are inherent here
        pred_list = np.asarray(pred).tolist()
        test_preds, cur = [], 0
        for b_num in num.tolist():
            test_preds.append(pred_list[cur:cur + int(b_num)])
            cur += int(b_num)
        return test_preds
    return loss, pred, label_vec


# ------------------------------ parameters ------------------------------
def init_params(key):
    ks = jax.random.split(key, 9)

    def nrm(k, shape, s=0.05):
        return (s * jax.random.normal(k, shape)).astype(jnp.float32)

    wqkv = jnp.zeros((H, QKV_PAD), jnp.float32).at[:, :3 * H].set(nrm(ks[3], (H, 3 * H)))
    return {
        # surrogate "BERT" encoder
        "word_emb": nrm(ks[0], (V, H)),
        "pos_emb":  nrm(ks[1], (S, H)),
        "type_emb": nrm(ks[2], (2, H)),
        "emb_ln_g": jnp.ones((H,), jnp.float32),
        "emb_ln_b": jnp.zeros((H,), jnp.float32),
        # matmul weights in bf16 (MXU), QKV lane-padded to 128 output columns
        "wqkv": wqkv.astype(jnp.bfloat16),
        "bqkv": jnp.zeros((1, QKV_PAD), jnp.float32),
        "wo":   nrm(ks[4], (H, H)).astype(jnp.bfloat16),
        "bo":   jnp.zeros((1, H), jnp.float32),
        "ln1g": jnp.ones((1, H), jnp.float32),
        "ln1b": jnp.zeros((1, H), jnp.float32),
        "w1":   nrm(ks[5], (H, FF)).astype(jnp.bfloat16),
        "b1":   jnp.zeros((1, FF), jnp.float32),
        "w2":   nrm(ks[6], (FF, H)).astype(jnp.bfloat16),
        "b2":   jnp.zeros((1, H), jnp.float32),
        "ln2g": jnp.ones((1, H), jnp.float32),
        "ln2b": jnp.zeros((1, H), jnp.float32),
        # hidden2tag: Linear(2H, MID) -> ReLU -> Linear(MID, L)
        "t_w1": nrm(ks[7], (2 * H, MID)).astype(jnp.bfloat16),
        "t_b1": jnp.zeros((1, MID), jnp.float32),
        "t_w2": nrm(ks[8], (MID, L)).astype(jnp.bfloat16),
        "t_b2": jnp.zeros((1, L), jnp.float32),
    }


if __name__ == "__main__":
    key = jax.random.PRNGKey(0)
    pkey, dkey = jax.random.split(key)
    params = init_params(pkey)

    k1, k2 = jax.random.split(dkey)
    ins_tensor = jax.random.randint(k1, (B, S), 0, V, dtype=jnp.int32)
    token_type_ids = jnp.zeros((B, S), jnp.int32)
    pos_en = jnp.broadcast_to(jnp.arange(S, dtype=jnp.int32), (B, S))
    padding_mask = jnp.ones((B, S), jnp.int32)
    attention_mask = jnp.ones((B, S), jnp.int32)
    # (start, num): 2 relations per example; markers at start+4i and start+4i+2
    rels_pos = jnp.array([[1, 2], [2, 2]], dtype=jnp.int32)
    rels = jax.random.randint(k2, (B, MAX_R), 0, L, dtype=jnp.int32)

    loss, pred, label_vec = marker_re_forward(
        params, ins_tensor, rels, rels_pos, pos_en, padding_mask,
        token_type_ids, attention_mask, test=False)
    jax.block_until_ready((loss, pred, label_vec))
    print("KERNEL_OK")
</pallas_src>

<mosaic_0001>
module attributes {stable_mosaic.version = 11 : i64} {
  func.func @fused_marker_re_kernel(%arg0: memref<32x32xf32, #tpu.memory_space<vmem>>, %arg1: memref<32x32xf32, #tpu.memory_space<vmem>>, %arg2: memref<32x128xbf16, #tpu.memory_space<vmem>>, %arg3: memref<1x128xf32, #tpu.memory_space<vmem>>, %arg4: memref<32x32xbf16, #tpu.memory_space<vmem>>, %arg5: memref<1x32xf32, #tpu.memory_space<vmem>>, %arg6: memref<1x32xf32, #tpu.memory_space<vmem>>, %arg7: memref<1x32xf32, #tpu.memory_space<vmem>>, %arg8: memref<32x128xbf16, #tpu.memory_space<vmem>>, %arg9: memref<1x128xf32, #tpu.memory_space<vmem>>, %arg10: memref<128x32xbf16, #tpu.memory_space<vmem>>, %arg11: memref<1x32xf32, #tpu.memory_space<vmem>>, %arg12: memref<1x32xf32, #tpu.memory_space<vmem>>, %arg13: memref<1x32xf32, #tpu.memory_space<vmem>>, %arg14: memref<4x1xi32, #tpu.memory_space<vmem>>, %arg15: memref<4x1xi32, #tpu.memory_space<vmem>>, %arg16: memref<4x1xi32, #tpu.memory_space<vmem>>, %arg17: memref<4x1xf32, #tpu.memory_space<vmem>>, %arg18: memref<64x32xbf16, #tpu.memory_space<vmem>>, %arg19: memref<1x32xf32, #tpu.memory_space<vmem>>, %arg20: memref<32x5xbf16, #tpu.memory_space<vmem>>, %arg21: memref<1x5xf32, #tpu.memory_space<vmem>>, %arg22: memref<1x1xf32, #tpu.memory_space<vmem>>, %arg23: memref<1x4xi32, #tpu.memory_space<vmem>>) attributes {dimension_semantics = [], scalar_prefetch = 0 : i64, scratch_operands = 0 : i64, tpu.core_type = #tpu.core_type<tc>} {
    %c0 = arith.constant 0 : index
    %c0_0 = arith.constant 0 : index
    %0 = vector.load %arg0[%c0, %c0_0] : memref<32x32xf32, #tpu.memory_space<vmem>>, vector<32x32xf32>
    %1 = arith.truncf %0 : vector<32x32xf32> to vector<32x32xbf16>
    %c0_1 = arith.constant 0 : index
    %c0_2 = arith.constant 0 : index
    %2 = vector.load %arg2[%c0_1, %c0_2] : memref<32x128xbf16, #tpu.memory_space<vmem>>, vector<32x128xbf16>
    %cst = arith.constant dense<0.000000e+00> : vector<32x128xf32>
    %3 = tpu.matmul %1, %2, %cst {dimension_numbers = #tpu.dot_dimension_numbers<[1], [0], [0], [1], [0, 0, 1, 1], [], []>} : vector<32x32xbf16>, vector<32x128xbf16>, vector<32x128xf32> -> vector<32x128xf32>
    %c0_3 = arith.constant 0 : index
    %c0_4 = arith.constant 0 : index
    %4 = vector.load %arg3[%c0_3, %c0_4] : memref<1x128xf32, #tpu.memory_space<vmem>>, vector<1x128xf32>
    %5 = vector.broadcast %4 : vector<1x128xf32> to vector<32x128xf32>
    %6 = arith.addf %3, %5 : vector<32x128xf32>
    %7 = vector.extract_strided_slice %6 {offsets = [0, 0], sizes = [32, 32], strides = [1, 1]} : vector<32x128xf32> to vector<32x32xf32>
    %8 = vector.extract_strided_slice %6 {offsets = [0, 32], sizes = [32, 32], strides = [1, 1]} : vector<32x128xf32> to vector<32x32xf32>
    %9 = vector.extract_strided_slice %6 {offsets = [0, 64], sizes = [32, 32], strides = [1, 1]} : vector<32x128xf32> to vector<32x32xf32>
    %10 = arith.truncf %7 : vector<32x32xf32> to vector<32x32xbf16>
    %11 = arith.truncf %8 : vector<32x32xf32> to vector<32x32xbf16>
    %cst_5 = arith.constant dense<0.000000e+00> : vector<32x32xf32>
    %12 = tpu.matmul %10, %11, %cst_5 {dimension_numbers = #tpu.dot_dimension_numbers<[1], [1], [0], [0], [0, 0, 1, 0], [], []>} : vector<32x32xbf16>, vector<32x32xbf16>, vector<32x32xf32> -> vector<32x32xf32>
    %cst_6 = arith.constant 0.176776692 : f32
    %13 = vector.broadcast %cst_6 : f32 to vector<32x32xf32>
    %14 = arith.mulf %12, %13 : vector<32x32xf32>
    %c0_7 = arith.constant 0 : index
    %c0_8 = arith.constant 0 : index
    %15 = vector.load %arg1[%c0_7, %c0_8] : memref<32x32xf32, #tpu.memory_space<vmem>>, vector<32x32xf32>
    %16 = arith.addf %14, %15 : vector<32x32xf32>
    %cst_9 = arith.constant dense<0xFF800000> : vector<32xf32>
    %17 = vector.multi_reduction <maximumf>, %16, %cst_9 [1] : vector<32x32xf32> to vector<32xf32>
    %18 = vector.shape_cast %17 : vector<32xf32> to vector<32x1xf32>
    %19 = vector.broadcast %18 : vector<32x1xf32> to vector<32x32xf32>
    %20 = arith.subf %16, %19 : vector<32x32xf32>
    %21 = math.exp %20 : vector<32x32xf32>
    %cst_10 = arith.constant dense<0.000000e+00> : vector<32xf32>
    %22 = vector.multi_reduction <add>, %21, %cst_10 [1] : vector<32x32xf32> to vector<32xf32>
    %23 = vector.shape_cast %22 : vector<32xf32> to vector<32x1xf32>
    %24 = tpu.reciprocal %23 {approx = true} : vector<32x1xf32> -> vector<32x1xf32>
    %25 = vector.broadcast %24 : vector<32x1xf32> to vector<32x32xf32>
    %26 = arith.mulf %21, %25 : vector<32x32xf32>
    %27 = arith.truncf %26 : vector<32x32xf32> to vector<32x32xbf16>
    %28 = arith.truncf %9 : vector<32x32xf32> to vector<32x32xbf16>
    %cst_11 = arith.constant dense<0.000000e+00> : vector<32x32xf32>
    %29 = tpu.matmul %27, %28, %cst_11 {dimension_numbers = #tpu.dot_dimension_numbers<[1], [0], [0], [1], [0, 0, 1, 1], [], []>} : vector<32x32xbf16>, vector<32x32xbf16>, vector<32x32xf32> -> vector<32x32xf32>
    %30 = arith.truncf %29 : vector<32x32xf32> to vector<32x32xbf16>
    %c0_12 = arith.constant 0 : index
    %c0_13 = arith.constant 0 : index
    %31 = vector.load %arg4[%c0_12, %c0_13] : memref<32x32xbf16, #tpu.memory_space<vmem>>, vector<32x32xbf16>
    %cst_14 = arith.constant dense<0.000000e+00> : vector<32x32xf32>
    %32 = tpu.matmul %30, %31, %cst_14 {dimension_numbers = #tpu.dot_dimension_numbers<[1], [0], [0], [1], [0, 0, 1, 1], [], []>} : vector<32x32xbf16>, vector<32x32xbf16>, vector<32x32xf32> -> vector<32x32xf32>
    %c0_15 = arith.constant 0 : index
    %c0_16 = arith.constant 0 : index
    %33 = vector.load %arg5[%c0_15, %c0_16] : memref<1x32xf32, #tpu.memory_space<vmem>>, vector<1x32xf32>
    %34 = vector.broadcast %33 : vector<1x32xf32> to vector<32x32xf32>
    %35 = arith.addf %32, %34 : vector<32x32xf32>
    %36 = arith.addf %0, %35 : vector<32x32xf32>
    %c0_17 = arith.constant 0 : index
    %c0_18 = arith.constant 0 : index
    %37 = vector.load %arg6[%c0_17, %c0_18] : memref<1x32xf32, #tpu.memory_space<vmem>>, vector<1x32xf32>
    %c0_19 = arith.constant 0 : index
    %c0_20 = arith.constant 0 : index
    %38 = vector.load %arg7[%c0_19, %c0_20] : memref<1x32xf32, #tpu.memory_space<vmem>>, vector<1x32xf32>
    %cst_21 = arith.constant dense<0.000000e+00> : vector<32xf32>
    %39 = vector.multi_reduction <add>, %36, %cst_21 [1] : vector<32x32xf32> to vector<32xf32>
    %40 = vector.shape_cast %39 : vector<32xf32> to vector<32x1xf32>
    %cst_22 = arith.constant 3.200000e+01 : f32
    %41 = vector.broadcast %cst_22 : f32 to vector<32x1xf32>
    %42 = arith.divf %40, %41 : vector<32x1xf32>
    %43 = vector.broadcast %42 : vector<32x1xf32> to vector<32x32xf32>
    %44 = arith.subf %36, %43 : vector<32x32xf32>
    %45 = arith.mulf %44, %44 : vector<32x32xf32>
    %cst_23 = arith.constant dense<0.000000e+00> : vector<32xf32>
    %46 = vector.multi_reduction <add>, %45, %cst_23 [1] : vector<32x32xf32> to vector<32xf32>
    %47 = vector.shape_cast %46 : vector<32xf32> to vector<32x1xf32>
    %cst_24 = arith.constant 3.200000e+01 : f32
    %48 = vector.broadcast %cst_24 : f32 to vector<32x1xf32>
    %49 = arith.divf %47, %48 : vector<32x1xf32>
    %50 = vector.broadcast %42 : vector<32x1xf32> to vector<32x32xf32>
    %51 = arith.subf %36, %50 : vector<32x32xf32>
    %cst_25 = arith.constant 9.99999996E-13 : f32
    %52 = vector.broadcast %cst_25 : f32 to vector<32x1xf32>
    %53 = arith.addf %49, %52 : vector<32x1xf32>
    %54 = math.rsqrt %53 : vector<32x1xf32>
    %55 = vector.broadcast %54 : vector<32x1xf32> to vector<32x32xf32>
    %56 = arith.mulf %51, %55 : vector<32x32xf32>
    %57 = vector.broadcast %37 : vector<1x32xf32> to vector<32x32xf32>
    %58 = arith.mulf %56, %57 : vector<32x32xf32>
    %59 = vector.broadcast %38 : vector<1x32xf32> to vector<32x32xf32>
    %60 = arith.addf %58, %59 : vector<32x32xf32>
    %61 = arith.truncf %60 : vector<32x32xf32> to vector<32x32xbf16>
    %c0_26 = arith.constant 0 : index
    %c0_27 = arith.constant 0 : index
    %62 = vector.load %arg8[%c0_26, %c0_27] : memref<32x128xbf16, #tpu.memory_space<vmem>>, vector<32x128xbf16>
    %cst_28 = arith.constant dense<0.000000e+00> : vector<32x128xf32>
    %63 = tpu.matmul %61, %62, %cst_28 {dimension_numbers = #tpu.dot_dimension_numbers<[1], [0], [0], [1], [0, 0, 1, 1], [], []>} : vector<32x32xbf16>, vector<32x128xbf16>, vector<32x128xf32> -> vector<32x128xf32>
    %c0_29 = arith.constant 0 : index
    %c0_30 = arith.constant 0 : index
    %64 = vector.load %arg9[%c0_29, %c0_30] : memref<1x128xf32, #tpu.memory_space<vmem>>, vector<1x128xf32>
    %65 = vector.broadcast %64 : vector<1x128xf32> to vector<32x128xf32>
    %66 = arith.addf %63, %65 : vector<32x128xf32>
    %cst_31 = arith.constant 0.000000e+00 : f32
    %67 = vector.broadcast %cst_31 : f32 to vector<32x128xf32>
    %68 = arith.maximumf %66, %67 : vector<32x128xf32>
    %69 = arith.truncf %68 : vector<32x128xf32> to vector<32x128xbf16>
    %c0_32 = arith.constant 0 : index
    %c0_33 = arith.constant 0 : index
    %70 = vector.load %arg10[%c0_32, %c0_33] : memref<128x32xbf16, #tpu.memory_space<vmem>>, vector<128x32xbf16>
    %cst_34 = arith.constant dense<0.000000e+00> : vector<32x32xf32>
    %71 = tpu.matmul %69, %70, %cst_34 {dimension_numbers = #tpu.dot_dimension_numbers<[1], [0], [0], [1], [0, 0, 1, 1], [], []>} : vector<32x128xbf16>, vector<128x32xbf16>, vector<32x32xf32> -> vector<32x32xf32>
    %c0_35 = arith.constant 0 : index
    %c0_36 = arith.constant 0 : index
    %72 = vector.load %arg11[%c0_35, %c0_36] : memref<1x32xf32, #tpu.memory_space<vmem>>, vector<1x32xf32>
    %73 = vector.broadcast %72 : vector<1x32xf32> to vector<32x32xf32>
    %74 = arith.addf %71, %73 : vector<32x32xf32>
    %75 = arith.addf %60, %74 : vector<32x32xf32>
    %c0_37 = arith.constant 0 : index
    %c0_38 = arith.constant 0 : index
    %76 = vector.load %arg12[%c0_37, %c0_38] : memref<1x32xf32, #tpu.memory_space<vmem>>, vector<1x32xf32>
    %c0_39 = arith.constant 0 : index
    %c0_40 = arith.constant 0 : index
    %77 = vector.load %arg13[%c0_39, %c0_40] : memref<1x32xf32, #tpu.memory_space<vmem>>, vector<1x32xf32>
    %cst_41 = arith.constant dense<0.000000e+00> : vector<32xf32>
    %78 = vector.multi_reduction <add>, %75, %cst_41 [1] : vector<32x32xf32> to vector<32xf32>
    %79 = vector.shape_cast %78 : vector<32xf32> to vector<32x1xf32>
    %cst_42 = arith.constant 3.200000e+01 : f32
    %80 = vector.broadcast %cst_42 : f32 to vector<32x1xf32>
    %81 = arith.divf %79, %80 : vector<32x1xf32>
    %82 = vector.broadcast %81 : vector<32x1xf32> to vector<32x32xf32>
    %83 = arith.subf %75, %82 : vector<32x32xf32>
    %84 = arith.mulf %83, %83 : vector<32x32xf32>
    %cst_43 = arith.constant dense<0.000000e+00> : vector<32xf32>
    %85 = vector.multi_reduction <add>, %84, %cst_43 [1] : vector<32x32xf32> to vector<32xf32>
    %86 = vector.shape_cast %85 : vector<32xf32> to vector<32x1xf32>
    %cst_44 = arith.constant 3.200000e+01 : f32
    %87 = vector.broadcast %cst_44 : f32 to vector<32x1xf32>
    %88 = arith.divf %86, %87 : vector<32x1xf32>
    %89 = vector.broadcast %81 : vector<32x1xf32> to vector<32x32xf32>
    %90 = arith.subf %75, %89 : vector<32x32xf32>
    %cst_45 = arith.constant 9.99999996E-13 : f32
    %91 = vector.broadcast %cst_45 : f32 to vector<32x1xf32>
    %92 = arith.addf %88, %91 : vector<32x1xf32>
    %93 = math.rsqrt %92 : vector<32x1xf32>
    %94 = vector.broadcast %93 : vector<32x1xf32> to vector<32x32xf32>
    %95 = arith.mulf %90, %94 : vector<32x32xf32>
    %96 = vector.broadcast %76 : vector<1x32xf32> to vector<32x32xf32>
    %97 = arith.mulf %95, %96 : vector<32x32xf32>
    %98 = vector.broadcast %77 : vector<1x32xf32> to vector<32x32xf32>
    %99 = arith.addf %97, %98 : vector<32x32xf32>
    %100 = tpu.iota {dimensions = array<i32: 1>} : vector<4x32xi32>
    %c0_46 = arith.constant 0 : index
    %c0_47 = arith.constant 0 : index
    %101 = vector.load %arg14[%c0_46, %c0_47] : memref<4x1xi32, #tpu.memory_space<vmem>>, vector<4x1xi32>
    %102 = vector.broadcast %101 : vector<4x1xi32> to vector<4x32xi32>
    %103 = arith.cmpi eq, %100, %102 : vector<4x32xi32>
    %104 = arith.extui %103 : vector<4x32xi1> to vector<4x32xi32>
    %105 = arith.sitofp %104 : vector<4x32xi32> to vector<4x32xf32>
    %106 = arith.truncf %105 : vector<4x32xf32> to vector<4x32xbf16>
    %c0_48 = arith.constant 0 : index
    %c0_49 = arith.constant 0 : index
    %107 = vector.load %arg15[%c0_48, %c0_49] : memref<4x1xi32, #tpu.memory_space<vmem>>, vector<4x1xi32>
    %108 = vector.broadcast %107 : vector<4x1xi32> to vector<4x32xi32>
    %109 = arith.cmpi eq, %100, %108 : vector<4x32xi32>
    %110 = arith.extui %109 : vector<4x32xi1> to vector<4x32xi32>
    %111 = arith.sitofp %110 : vector<4x32xi32> to vector<4x32xf32>
    %112 = arith.truncf %111 : vector<4x32xf32> to vector<4x32xbf16>
    %113 = arith.truncf %99 : vector<32x32xf32> to vector<32x32xbf16>
    %cst_50 = arith.constant dense<0.000000e+00> : vector<4x32xf32>
    %114 = tpu.matmul %106, %113, %cst_50 {dimension_numbers = #tpu.dot_dimension_numbers<[1], [0], [0], [1], [0, 0, 1, 1], [], []>} : vector<4x32xbf16>, vector<32x32xbf16>, vector<4x32xf32> -> vector<4x32xf32>
    %cst_51 = arith.constant dense<0.000000e+00> : vector<4x32xf32>
    %115 = tpu.matmul %112, %113, %cst_51 {dimension_numbers = #tpu.dot_dimension_numbers<[1], [0], [0], [1], [0, 0, 1, 1], [], []>} : vector<4x32xbf16>, vector<32x32xbf16>, vector<4x32xf32> -> vector<4x32xf32>
    %116 = tpu.concatenate %114, %115 in 1 : vector<4x32xf32>, vector<4x32xf32> -> vector<4x64xf32>
    %117 = arith.truncf %116 : vector<4x64xf32> to vector<4x64xbf16>
    %c0_52 = arith.constant 0 : index
    %c0_53 = arith.constant 0 : index
    %118 = vector.load %arg18[%c0_52, %c0_53] : memref<64x32xbf16, #tpu.memory_space<vmem>>, vector<64x32xbf16>
    %cst_54 = arith.constant dense<0.000000e+00> : vector<4x32xf32>
    %119 = tpu.matmul %117, %118, %cst_54 {dimension_numbers = #tpu.dot_dimension_numbers<[1], [0], [0], [1], [0, 0, 1, 1], [], []>} : vector<4x64xbf16>, vector<64x32xbf16>, vector<4x32xf32> -> vector<4x32xf32>
    %c0_55 = arith.constant 0 : index
    %c0_56 = arith.constant 0 : index
    %120 = vector.load %arg19[%c0_55, %c0_56] : memref<1x32xf32, #tpu.memory_space<vmem>>, vector<1x32xf32>
    %121 = vector.broadcast %120 : vector<1x32xf32> to vector<4x32xf32>
    %122 = arith.addf %119, %121 : vector<4x32xf32>
    %cst_57 = arith.constant 0.000000e+00 : f32
    %123 = vector.broadcast %cst_57 : f32 to vector<4x32xf32>
    %124 = arith.maximumf %122, %123 : vector<4x32xf32>
    %125 = arith.truncf %124 : vector<4x32xf32> to vector<4x32xbf16>
    %c0_58 = arith.constant 0 : index
    %c0_59 = arith.constant 0 : index
    %126 = vector.load %arg20[%c0_58, %c0_59] : memref<32x5xbf16, #tpu.memory_space<vmem>>, vector<32x5xbf16>
    %cst_60 = arith.constant dense<0.000000e+00> : vector<4x5xf32>
    %127 = tpu.matmul %125, %126, %cst_60 {dimension_numbers = #tpu.dot_dimension_numbers<[1], [0], [0], [1], [0, 0, 1, 1], [], []>} : vector<4x32xbf16>, vector<32x5xbf16>, vector<4x5xf32> -> vector<4x5xf32>
    %c0_61 = arith.constant 0 : index
    %c0_62 = arith.constant 0 : index
    %128 = vector.load %arg21[%c0_61, %c0_62] : memref<1x5xf32, #tpu.memory_space<vmem>>, vector<1x5xf32>
    %129 = vector.broadcast %128 : vector<1x5xf32> to vector<4x5xf32>
    %130 = arith.addf %127, %129 : vector<4x5xf32>
    %c0_63 = arith.constant 0 : index
    %c0_64 = arith.constant 0 : index
    %131 = vector.load %arg17[%c0_63, %c0_64] : memref<4x1xf32, #tpu.memory_space<vmem>>, vector<4x1xf32>
    %cst_65 = arith.constant dense<0xFF800000> : vector<4xf32>
    %132 = vector.multi_reduction <maximumf>, %130, %cst_65 [1] : vector<4x5xf32> to vector<4xf32>
    %133 = vector.shape_cast %132 : vector<4xf32> to vector<4x1xf32>
    %134 = vector.broadcast %133 : vector<4x1xf32> to vector<4x5xf32>
    %135 = arith.subf %130, %134 : vector<4x5xf32>
    %136 = math.exp %135 : vector<4x5xf32>
    %cst_66 = arith.constant dense<0.000000e+00> : vector<4xf32>
    %137 = vector.multi_reduction <add>, %136, %cst_66 [1] : vector<4x5xf32> to vector<4xf32>
    %138 = vector.shape_cast %137 : vector<4xf32> to vector<4x1xf32>
    %139 = math.log %138 : vector<4x1xf32>
    %140 = arith.addf %133, %139 : vector<4x1xf32>
    %141 = tpu.iota {dimensions = array<i32: 1>} : vector<4x5xi32>
    %c0_67 = arith.constant 0 : index
    %c0_68 = arith.constant 0 : index
    %142 = vector.load %arg16[%c0_67, %c0_68] : memref<4x1xi32, #tpu.memory_space<vmem>>, vector<4x1xi32>
    %143 = vector.broadcast %142 : vector<4x1xi32> to vector<4x5xi32>
    %144 = arith.cmpi eq, %141, %143 : vector<4x5xi32>
    %cst_69 = arith.constant 0.000000e+00 : f32
    %145 = vector.broadcast %cst_69 : f32 to vector<4x5xf32>
    %146 = arith.select %144, %130, %145 : vector<4x5xi1>, vector<4x5xf32>
    %cst_70 = arith.constant dense<0.000000e+00> : vector<4xf32>
    %147 = vector.multi_reduction <add>, %146, %cst_70 [1] : vector<4x5xf32> to vector<4xf32>
    %148 = vector.shape_cast %147 : vector<4xf32> to vector<4x1xf32>
    %149 = arith.subf %140, %148 : vector<4x1xf32>
    %150 = arith.mulf %149, %131 : vector<4x1xf32>
    %cst_71 = arith.constant dense<0.000000e+00> : vector<1xf32>
    %151 = vector.multi_reduction <add>, %150, %cst_71 [0] : vector<4x1xf32> to vector<1xf32>
    %152 = vector.shape_cast %151 : vector<1xf32> to vector<1x1xf32>
    %cst_72 = arith.constant dense<0.000000e+00> : vector<1xf32>
    %153 = vector.multi_reduction <add>, %131, %cst_72 [0] : vector<4x1xf32> to vector<1xf32>
    %154 = vector.shape_cast %153 : vector<1xf32> to vector<1x1xf32>
    %155 = arith.divf %152, %154 : vector<1x1xf32>
    %c0_73 = arith.constant 0 : index
    %c0_74 = arith.constant 0 : index
    %156 = vector.load %arg22[%c0_73, %c0_74] : memref<1x1xf32, #tpu.memory_space<vmem>>, vector<1x1xf32>
    tpu.vector_store %arg22[%c0_73, %c0_74], %155 {strides = array<i32>} : memref<1x1xf32, #tpu.memory_space<vmem>>, vector<1x1xf32>,
    %157 = vector.broadcast %133 : vector<4x1xf32> to vector<4x5xf32>
    %158 = arith.cmpf oeq, %130, %157 : vector<4x5xf32>
    %159 = arith.sitofp %141 : vector<4x5xi32> to vector<4x5xf32>
    %cst_75 = arith.constant 5.000000e+00 : f32
    %160 = vector.broadcast %cst_75 : f32 to vector<4x5xf32>
    %161 = arith.select %158, %159, %160 : vector<4x5xi1>, vector<4x5xf32>
    %cst_76 = arith.constant dense<0x7F800000> : vector<4xf32>
    %162 = vector.multi_reduction <minimumf>, %161, %cst_76 [1] : vector<4x5xf32> to vector<4xf32>
    %163 = vector.shape_cast %162 : vector<4xf32> to vector<4x1xf32>
    %164 = tpu.iota {dimensions = array<i32: 0>} : vector<4x4xi32>
    %165 = tpu.iota {dimensions = array<i32: 1>} : vector<4x4xi32>
    %166 = arith.cmpi eq, %164, %165 : vector<4x4xi32>
    %167 = arith.extui %166 : vector<4x4xi1> to vector<4x4xi32>
    %168 = arith.sitofp %167 : vector<4x4xi32> to vector<4x4xf32>
    %cst_77 = arith.constant dense<0.000000e+00> : vector<1x4xf32>
    %169 = tpu.matmul %163, %168, %cst_77 {dimension_numbers = #tpu.dot_dimension_numbers<[0], [0], [1], [1], [0, 1, 1, 1], [], []>} : vector<4x1xf32>, vector<4x4xf32>, vector<1x4xf32> -> vector<1x4xf32>
    %170 = arith.fptosi %169 : vector<1x4xf32> to vector<1x4xi32>
    %c0_78 = arith.constant 0 : index
    %c0_79 = arith.constant 0 : index
    %171 = vector.load %arg23[%c0_78, %c0_79] : memref<1x4xi32, #tpu.memory_space<vmem>>, vector<1x4xi32>
    tpu.vector_store %arg23[%c0_78, %c0_79], %170 {strides = array<i32>} : memref<1x4xi32, #tpu.memory_space<vmem>>, vector<1x4xi32>,
    return
  }
}

</mosaic_0001>

<bundles_post_ra>
// kernel: _forward_core.1
= control target key start
LH: loop header
LB: loop body
LE: loop exit
PB: predicated region body
PF: predicated region fallthrough
CT: control target
= control target key end

     0   :  { %s1890_s0 = inlined_call_operand.vmem [shape: f32[32,32], index: 0, kind: input, shape index: {}]   ;;  %s1891_s1 = inlined_call_operand.vmem [shape: f32[32,32], index: 1, kind: input, shape index: {}]   ;;  %s1892_s2 = inlined_call_operand.vmem [shape: bf16[32,128], index: 2, kind: input, shape index: {}]   ;;  %s1893_s3 = inlined_call_operand.vmem [shape: f32[1,128], index: 3, kind: input, shape index: {}]   ;;  %s1894_s4 = inlined_call_operand.vmem [shape: bf16[32,32], index: 4, kind: input, shape index: {}]   ;;  %s1895_s5 = inlined_call_operand.vmem [shape: f32[1,32], index: 5, kind: input, shape index: {}]   ;;  %s1896_s6 = inlined_call_operand.vmem [shape: f32[1,32], index: 6, kind: input, shape index: {}]   ;;  %s1897_s7 = inlined_call_operand.vmem [shape: f32[1,32], index: 7, kind: input, shape index: {}]   ;;  %s1898_s8 = inlined_call_operand.vmem [shape: bf16[32,128], index: 8, kind: input, shape index: {}]   ;;  %s1899_s9 = inlined_call_operand.vmem [shape: f32[1,128], index: 9, kind: input, shape index: {}]   ;;  %s1900_s10 = inlined_call_operand.vmem [shape: bf16[128,32], index: 10, kind: input, shape index: {}]   ;;  %s1901_s11 = inlined_call_operand.vmem [shape: f32[1,32], index: 11, kind: input, shape index: {}]   ;;  %s1902_s12 = inlined_call_operand.vmem [shape: f32[1,32], index: 12, kind: input, shape index: {}]   ;;  %s1903_s13 = inlined_call_operand.vmem [shape: f32[1,32], index: 13, kind: input, shape index: {}]   ;;  %s1904_s14 = inlined_call_operand.vmem [shape: s32[4,1], index: 14, kind: input, shape index: {}]   ;;  %s1905_s15 = inlined_call_operand.vmem [shape: s32[4,1], index: 15, kind: input, shape index: {}]   ;;  %s1906_s16 = inlined_call_operand.vmem [shape: s32[4,1], index: 16, kind: input, shape index: {}]   ;;  %s1907_s17 = inlined_call_operand.vmem [shape: f32[4,1], index: 17, kind: input, shape index: {}]   ;;  %s1908_s18 = inlined_call_operand.vmem [shape: bf16[64,32], index: 18, kind: input, shape index: {}]   ;;  %s1909_s19 = inlined_call_operand.vmem [shape: f32[1,32], index: 19, kind: input, shape index: {}]   ;;  %s1910_s20 = inlined_call_operand.vmem [shape: bf16[32,5], index: 20, kind: input, shape index: {}]   ;;  %s1911_s21 = inlined_call_operand.vmem [shape: f32[1,5], index: 21, kind: input, shape index: {}]   ;;  %s1912_s22 = inlined_call_operand.hbm [shape: f32[1,1], index: 22, kind: output, shape index: {0}]   ;;  %s1913_s23 = inlined_call_operand.vmem [shape: s32[1,4], index: 23, kind: output, shape index: {1}]  }
   0x1   :  { %1918 = sst [smem:[#allocation5_spill]] %s1890_s0 }
   0x2   :  { %1919 = sst [smem:[#allocation6_spill]] %s1891_s1 }
   0x3   :  { %1920 = sst [smem:[#allocation7_spill]] %s1892_s2 }
   0x4   :  { %1921 = sst [smem:[#allocation8_spill]] %s1893_s3 }
   0x5   :  { %1922 = sst [smem:[#allocation9_spill]] %s1894_s4 }
   0x6   :  { %1923 = sst [smem:[#allocation10_spill]] %s1895_s5 }
   0x7   :  { %1924 = sst [smem:[#allocation11_spill]] %s1896_s6 }
   0x8   :  { %1925 = sst [smem:[#allocation12_spill]] %s1897_s7 }
   0x9   :  { %s1926_s24 = sld [smem:[#allocation7_spill]]  ;;  %vm104_vm0 = vcmask 261120  }
   0xa   :  { %s1927_s2 = sld [smem:[#allocation5_spill]] }
   0xf   :  { %v1449_v0 = vld [vmem:[%s1926_s24 + $0x8] sm:$0xff]   ;;  %v1450_v1 = vld [vmem:[%s1926_s24] sm:$0xff]  }
  0x10   :  { %1335 = vmatprep.subr.bf16.mxu0 %v1449_v0  ;;  %v1665_v2 = vld [vmem:[%s1927_s2] sm:$0xff]  ;;  %v1670_v3 = vld [vmem:[%s1927_s2 + $0x8] sm:$0xff]  ;;  %v1675_v4 = vld [vmem:[%s1927_s2 + $0x10] sm:$0xff] }
  0x11   :  { %1336 = vmatpush3.bf16.msra.mxu0 %v1449_v0  ;;  %v79_v5 = vpack.c.bf16 %v1670_v3, %v1665_v2  ;;  %v1682_v6 = vld [vmem:[%s1927_s2 + $0x18] sm:$0xff] }
  0x12   :  { %1337 = vmatprep.subr.bf16.mxu0 %v1450_v1  ;;  %v80_v7 = vpack.c.bf16 %v1682_v6, %v1675_v4 }
  0x13   :  { %1339 = vmatprep.mubr.msk.bf16.mxu0 %vm104_vm0, %v79_v5 }
  0x15   :  { %1338 = vmatpush3.bf16.msra.mxu0 %v1450_v1 }
  0x18   :  { %1340 = vmatmul.mubr.msk.bf16.vlgmr.msra.gmra.mxu0 %vm104_vm0, %v80_v7 }
  0x19   :  { %29 = vsyncpa [#allocation3], 0  ;;  %s1928_s30 = sld [smem:[#allocation8_spill]]  ;;  %s1529_s24 = smov 96   ;;  %vm1533_vm1 = vmmov 0   ;;  %vm942_vm4 = vcmask 523264  }
  0x1a   :  { %s1929_s1 = sld [smem:[#allocation6_spill]]  ;;  %s1530_s29 = smov 64   ;;  %vm1055_vm5 = vcmask 35840   ;;  %vm1145_vm7 = vcmask 1043456   ;;  %vm1141_vm10 = vcmask 31744   ;;  %vm1079_vm11 = vcmask 3072  }
  0x1b   :  { %s1930_s4 = sld [smem:[#allocation9_spill]]  ;;  %s1534_s3 = smov 32   ;;  %vm1096_vm12 = vcmask 0  }
  0x1c   :  { %s1932_s26 = sld [smem:[#allocation11_spill]] }
  0x1d   :  { %s1933_s27 = sld [smem:[#allocation12_spill]] }
  0x1f   :  { %v1240_v9 = vld [vmem:[%s1928_s30] ss:$0 sm:$0xff] }
  0x20   :  { %v235_v24 = vld [vmem:[%s1929_s1 + $0x10] sm:$0xff]  ;;  %v233_v27 = vld [vmem:[%s1929_s1] sm:$0xff]  ;;  %v234_v34 = vld [vmem:[%s1929_s1 + $0x8] sm:$0xff] }
  0x21   :  { %v236_v38 = vld [vmem:[%s1929_s1 + $0x18] sm:$0xff]  ;;  %s1931_s1 = sld [smem:[#allocation10_spill]] }
  0xd8   :  { %v1341_v8 = vpop.f32.mrf.mxu0 }
  0xd9   :  { %v154_v12 = vadd.f32 %v1341_v8, %v1240_v9 }
  0xda   :  { %v145_v10 = vpop.f32.mrf.mxu0 }
  0xdb   :  { %v146_v15 = vadd.f32 %v1240_v9, %v145_v10 }
  0xdc   :  { %v1342_v11 = vpop.f32.mrf.mxu0 }
  0xdd   :  { %v157_v13 = vadd.f32 %v1342_v11, %v1240_v9 }
  0xde   :  { %v148_v14 = vpop.f32.mrf.mxu0 }
  0xdf   :  { %v1691_v16 = vpack.c.bf16 %v157_v13, %v154_v12  ;;  %v149_v17 = vadd.f32 %v1240_v9, %v148_v14 }
  0xe1   :  { %v160_v18 = vpack.c.bf16 %v149_v17, %v146_v15  ;;  %166 = vrot.lane.b32.xlu0 %v1691_v16, %s1529_s24 }
  0xe3   :  { %1347 = vmatprep.mubr.msk.bf16.mxu1 %vm104_vm0, %v160_v18 }
  0xe5   :  { %164 = vrot.lane.b32.xlu0 %v160_v18, %s1529_s24 }
 0x153   :  { %v167_v19 = vpop.permute.xlu0 %166 }
 0x154   :  { %1436 = vmatprep.subr.msk.bf16.mxu1 %vm104_vm0, %v167_v19  ;;  %v178_v20 = vsel %vm104_vm0, %v167_v19, 0  ;;  %v1451_v19 = vld [vmem:[%s1930_s4 + $0x8] sm:$0xff]  }
 0x155   :  { %1344 = vmatpush3.bf16.xpose.msra.mxu1 %v178_v20  ;;  %v1452_v20 = vld [vmem:[%s1930_s4] sm:$0xff]  }
 0x157   :  { %v165_v21 = vpop.permute.xlu0 %164 }
 0x158   :  { %1437 = vmatprep.subr.msk.bf16.mxu1 %vm104_vm0, %v165_v21  ;;  %v175_v22 = vsel %vm104_vm0, %v165_v21, 0 }
 0x15d   :  { %1346 = vmatpush3.bf16.xpose.msra.mxu1 %v175_v22 }
 0x164   :  { %1348 = vmatmul.mubr.msk.bf16.vlgmr.msra.gmra.mxu1 %vm104_vm0, %v1691_v16 }
 0x224   :  { %v1349_v23 = vpop.f32.mrf.mxu1 }
 0x225   :  { %v231_v25 = vmul.f32 0.17677669, %v1349_v23 }
 0x226   :  { %v214_v26 = vpop.f32.mrf.mxu1 }
 0x227   :  { %v229_v28 = vmul.f32 0.17677669, %v214_v26  ;;  %v239_v29 = vadd.f32 %v235_v24, %v231_v25 }
 0x228   :  { %v1350_v30 = vpop.f32.mrf.mxu1 }
 0x229   :  { %v247_v31 = vsel %vm104_vm0, %v239_v29, -inf  ;;  %v237_v32 = vadd.f32 %v233_v27, %v229_v28  ;;  %v232_v35 = vmul.f32 0.17677669, %v1350_v30  ;;  %v1249_v28 = vld [vmem:[%s1931_s1] ss:$0 sm:$0xff] }
 0x22a   :  { %248 = vmax.xlane.f32.xlu0 %v247_v31  ;;  %v217_v33 = vpop.f32.mrf.mxu1 }
 0x22b   :  { %v230_v36 = vmul.f32 0.17677669, %v217_v33  ;;  %v241_v37 = vsel %vm104_vm0, %v237_v32, -inf  ;;  %v240_v41 = vadd.f32 %v236_v38, %v232_v35 }
 0x22c   :  { %242 = vmax.xlane.f32.xlu1 %v241_v37 }
 0x22d   :  { %v238_v39 = vadd.f32 %v234_v34, %v230_v36  ;;  %v250_v42 = vsel %vm104_vm0, %v240_v41, -inf }
 0x22f   :  { %v244_v40 = vsel %vm104_vm0, %v238_v39, -inf }
 0x230   :  { %245 = vmax.xlane.f32.xlu1 %v244_v40 }
 0x234   :  { %251 = vmax.xlane.f32.xlu1 %v250_v42 }
 0x240   :  { %287 = vrot.lane.b32.xlu0 %v160_v18, %s1530_s29 }
 0x2b3   :  { %v249_v43 = vpop.xlane.xlu0 %248 }
 0x2b4   :  { %v255_v44 = vsub.f32 %v239_v29, %v249_v43 }
 0x2b5   :  { %v243_v45 = vpop.xlane.xlu1 %242 }
 0x2b6   :  { %v261_v46 = vmul.f32 1.442695, %v255_v44  ;;  %v253_v47 = vsub.f32 %v237_v32, %v243_v45 }
 0x2b7   :  { %v288_v8 = vpop.permute.xlu0 %287 }
 0x2b8   :  { %1469 = vpow2.f32 %v261_v46  ;;  %v257_v48 = vmul.f32 1.442695, %v253_v47 }
 0x2b9   :  { %v246_v49 = vpop.xlane.xlu1 %245 }
 0x2ba   :  { %1471 = vpow2.f32 %v257_v48  ;;  %v254_v50 = vsub.f32 %v238_v39, %v246_v49 }
 0x2bc   :  { %v259_v53 = vmul.f32 1.442695, %v254_v50 }
 0x2bd   :  { %v252_v51 = vpop.xlane.xlu1 %251 }
 0x2be   :  { %v256_v52 = vsub.f32 %v240_v41, %v252_v51 }
 0x2c0   :  { %v263_v54 = vmul.f32 1.442695, %v256_v52 }
 0x2c2   :  { %1473 = vpow2.f32 %v263_v54 }
 0x2c3   :  { %1475 = vpow2.f32 %v259_v53 }
 0x2c5   :  { %v1470_v55 = vpop.eup %1469 }
 0x2c6   :  { %v271_v56 = vsel %vm104_vm0, %v1470_v55, 0.0 }
 0x2c7   :  { %v1472_v57 = vpop.eup %1471  ;;  %272 = vadd.xlane.f32.xlu1 %v271_v56 }
 0x2c8   :  { %v265_v58 = vsel %vm104_vm0, %v1472_v57, 0.0 }
 0x2cb   :  { %266 = vadd.xlane.f32.xlu1 %v265_v58 }
 0x2cf   :  { %v1474_v59 = vpop.eup %1473 }
 0x2d0   :  { %v274_v60 = vsel %vm104_vm0, %v1474_v59, 0.0  ;;  %v1476_v61 = vpop.eup %1475 }
 0x2d1   :  { %275 = vadd.xlane.f32.xlu1 %v274_v60  ;;  %v268_v62 = vsel %vm104_vm0, %v1476_v61, 0.0  ;;  %v1453_v60 = vld [vmem:[%s1898_s8 + $0x8] sm:$0xff]  }
 0x2d2   :  { %1367 = vmatprep.subr.bf16.mxu1 %v1453_v60 }
 0x2d3   :  { %1368 = vmatpush3.bf16.msra.mxu1 %v1453_v60 }
 0x2d5   :  { %269 = vadd.xlane.f32.xlu1 %v268_v62  ;;  %v1455_v62 = vld [vmem:[%s1900_s10 + $0x38] sm:$0xff]  }
 0x2e6   :  { %289 = vrot.lane.b32.xlu1 %v1691_v16, %s1530_s29 }
 0x350   :  { %v273_v63 = vpop.xlane.xlu1 %272 }
 0x354   :  { %v267_v0 = vpop.xlane.xlu1 %266 }
 0x35a   :  { %v276_v1 = vpop.xlane.xlu1 %275 }
 0x35b   :  { %1477 = vrcp.f32 %v276_v1  ;;  %v1458_v1 = vld [vmem:[%s1900_s10 + $0x20] sm:$0xff]  }
 0x35c   :  { %1479 = vrcp.f32 %v267_v0  ;;  %v1457_v0 = vld [vmem:[%s1900_s10 + $0x28] sm:$0xff]  }
 0x35d   :  { %1481 = vrcp.f32 %v273_v63  ;;  %v1456_v63 = vld [vmem:[%s1900_s10 + $0x30] sm:$0xff]  }
 0x35e   :  { %v270_v5 = vpop.xlane.xlu1 %269 }
 0x35f   :  { %1483 = vrcp.f32 %v270_v5  ;;  %v1459_v5 = vld [vmem:[%s1900_s10 + $0x18] sm:$0xff]  }
 0x362   :  { %v290_v7 = vpop.permute.xlu1 %289 }
 0x363   :  { %1351 = vmatprep.subr.bf16.mxu0 %v290_v7 }
 0x364   :  { %1352 = vmatpush3.bf16.msra.mxu0 %v290_v7 }
 0x365   :  { %1353 = vmatprep.subr.bf16.mxu0 %v288_v8 }
 0x368   :  { %1354 = vmatpush3.bf16.msra.mxu0 %v288_v8  ;;  %v1478_v9 = vpop.eup %1477 }
 0x369   :  { %v1480_v10 = vpop.eup %1479  ;;  %v284_v13 = vmul.f32 %v1478_v9, %v1474_v59  ;;  %1359 = vmatprep.subr.bf16.mxu0 %v1451_v19 }
 0x36a   :  { %v1482_v11 = vpop.eup %1481  ;;  %v281_v14 = vmul.f32 %v1480_v10, %v1472_v57 }
 0x36b   :  { %v283_v16 = vmul.f32 %v1482_v11, %v1470_v55 }
 0x36c   :  { %v1484_v12 = vpop.eup %1483 }
 0x36d   :  { %v282_v15 = vmul.f32 %v1484_v12, %v1476_v61  ;;  %v286_v18 = vpack.c.bf16 %v284_v13, %v283_v16  ;;  %v1454_v61 = vld [vmem:[%s1898_s8] sm:$0xff]  }
 0x36e   :  { %1369 = vmatprep.subr.bf16.mxu1 %v1454_v61 }
 0x36f   :  { %v285_v17 = vpack.c.bf16 %v282_v15, %v281_v14  ;;  %1370 = vmatpush3.bf16.msra.mxu1 %v1454_v61 }
 0x371   :  { %1355 = vmatprep.mubr.msk.bf16.mxu0 %vm104_vm0, %v285_v17 }
 0x372   :  { %1356 = vmatmul.mubr.msk.bf16.vlgmr.msra.gmra.mxu0 %vm104_vm0, %v286_v18 }
 0x373   :  { %1360 = vmatpush3.bf16.msra.mxu0 %v1451_v19 }
 0x374   :  { %1361 = vmatprep.subr.bf16.mxu0 %v1452_v20 }
 0x377   :  { %1362 = vmatpush3.bf16.msra.mxu0 %v1452_v20 }
 0x378   :  { %1375 = vmatprep.subr.bf16.mxu0 %v1455_v62 }
 0x432   :  { %v1357_v21 = vpop.f32.mrf.mxu0 }
 0x434   :  { %v333_v22 = vpop.f32.mrf.mxu0 }
 0x436   :  { %v1358_v23 = vpop.f32.mrf.mxu0 }
 0x437   :  { %v349_v26 = vpack.c.bf16 %v1358_v23, %v1357_v21  ;;  %v1254_v21 = vld [vmem:[%s1932_s26] ss:$0 sm:$0xff] }
 0x438   :  { %v336_v24 = vpop.f32.mrf.mxu0 }
 0x439   :  { %v348_v25 = vpack.c.bf16 %v336_v24, %v333_v22 }
 0x43b   :  { %1363 = vmatprep.mubr.msk.bf16.mxu0 %vm104_vm0, %v348_v25 }
 0x43c   :  { %1364 = vmatmul.mubr.msk.bf16.vlgmr.msra.gmra.mxu0 %vm104_vm0, %v349_v26 }
 0x43d   :  { %1376 = vmatpush3.bf16.msra.mxu0 %v1455_v62 }
 0x43e   :  { %1377 = vmatprep.subr.bf16.mxu0 %v1456_v63 }
 0x441   :  { %1378 = vmatpush3.bf16.msra.mxu0 %v1456_v63 }
 0x442   :  { %1379 = vmatprep.subr.bf16.mxu0 %v1457_v0 }
 0x445   :  { %1380 = vmatpush3.bf16.msra.mxu0 %v1457_v0 }
 0x446   :  { %1381 = vmatprep.subr.bf16.mxu0 %v1458_v1 }
 0x449   :  { %1382 = vmatpush3.bf16.msra.mxu0 %v1458_v1 }
 0x44a   :  { %1383 = vmatprep.subr.bf16.mxu0 %v1459_v5 }
 0x44d   :  { %1384 = vmatpush3.bf16.msra.mxu0 %v1459_v5 }
 0x4fc   :  { %v1365_v27 = vpop.f32.mrf.mxu0 }
 0x4fd   :  { %v422_v30 = vadd.f32 %v1365_v27, %v1249_v28  ;;  %v1255_v27 = vld [vmem:[%s1933_s27] ss:$0 sm:$0xff] }
 0x4fe   :  { %v413_v29 = vpop.f32.mrf.mxu0 }
 0x4ff   :  { %v414_v31 = vadd.f32 %v1249_v28, %v413_v29  ;;  %v430_v38 = vadd.f32 %v422_v30, %v1675_v4 }
 0x500   :  { %v1366_v32 = vpop.f32.mrf.mxu0 }
 0x501   :  { %v428_v33 = vadd.f32 %v414_v31, %v1665_v2  ;;  %v425_v35 = vadd.f32 %v1366_v32, %v1249_v28  ;;  %v440_v41 = vsel %vm104_vm0, %v430_v38, 0.0 }
 0x502   :  { %v416_v34 = vpop.f32.mrf.mxu0 }
 0x503   :  { %v417_v36 = vadd.f32 %v1249_v28, %v416_v34  ;;  %v434_v37 = vsel %vm104_vm0, %v428_v33, 0.0  ;;  %v431_v42 = vadd.f32 %v425_v35, %v1682_v6 }
 0x504   :  { %435 = vadd.xlane.f32.xlu1 %v434_v37 }
 0x505   :  { %v429_v39 = vadd.f32 %v417_v36, %v1670_v3  ;;  %v443_v2 = vsel %vm104_vm0, %v431_v42, 0.0 }
 0x507   :  { %v437_v40 = vsel %vm104_vm0, %v429_v39, 0.0 }
 0x508   :  { %438 = vadd.xlane.f32.xlu0 %v437_v40  ;;  %441 = vadd.xlane.f32.xlu1 %v440_v41  ;;  %v1461_v40 = vld [vmem:[%s1900_s10 + $0x8] sm:$0xff]   ;;  %v1462_v41 = vld [vmem:[%s1900_s10] sm:$0xff]  }
 0x50c   :  { %444 = vadd.xlane.f32.xlu1 %v443_v2 }
 0x58d   :  { %v436_v43 = vpop.xlane.xlu1 %435 }
 0x58e   :  { %v447_v44 = vmul.f32 0.03125, %v436_v43  ;;  %v1256_v43 = vld [vmem:[%s1899_s9] ss:$0 sm:$0xff] }
 0x590   :  { %v451_v45 = vsub.f32 %v428_v33, %v447_v44 }
 0x591   :  { %v439_v46 = vpop.xlane.xlu0 %438  ;;  %v442_v47 = vpop.xlane.xlu1 %441 }
 0x592   :  { %v448_v4 = vmul.f32 0.03125, %v439_v46  ;;  %v449_v48 = vmul.f32 0.03125, %v442_v47  ;;  %v455_v49 = vmul.f32 %v451_v45, %v451_v45 }
 0x594   :  { %v452_v3 = vsub.f32 %v429_v39, %v448_v4  ;;  %v453_v50 = vsub.f32 %v430_v38, %v449_v48  ;;  %v459_v51 = vsel %vm104_vm0, %v455_v49, 0.0  ;;  %v1460_v39 = vld [vmem:[%s1900_s10 + $0x10] sm:$0xff]  }
 0x595   :  { %460 = vadd.xlane.f32.xlu1 %v459_v51  ;;  %v445_v52 = vpop.xlane.xlu1 %444  ;;  %1385 = vmatprep.subr.bf16.mxu0 %v1460_v39 }
 0x596   :  { %v450_v6 = vmul.f32 0.03125, %v445_v52  ;;  %v456_v53 = vmul.f32 %v452_v3, %v452_v3  ;;  %v457_v54 = vmul.f32 %v453_v50, %v453_v50  ;;  %1386 = vmatpush3.bf16.msra.mxu0 %v1460_v39 }
 0x597   :  { %1387 = vmatprep.subr.bf16.mxu0 %v1461_v40 }
 0x598   :  { %v454_v55 = vsub.f32 %v431_v42, %v450_v6  ;;  %v462_v56 = vsel %vm104_vm0, %v456_v53, 0.0  ;;  %v465_v57 = vsel %vm104_vm0, %v457_v54, 0.0  ;;  %v1261_v53 = vld [vmem:[%s1901_s11] ss:$0 sm:$0xff] }
 0x599   :  { %463 = vadd.xlane.f32.xlu0 %v462_v56  ;;  %466 = vadd.xlane.f32.xlu1 %v465_v57 }
 0x59a   :  { %v458_v58 = vmul.f32 %v454_v55, %v454_v55  ;;  %1388 = vmatpush3.bf16.msra.mxu0 %v1461_v40 }
 0x59b   :  { %1389 = vmatprep.subr.bf16.mxu0 %v1462_v41 }
 0x59c   :  { %v468_v59 = vsel %vm104_vm0, %v458_v58, 0.0 }
 0x59d   :  { %469 = vadd.xlane.f32.xlu0 %v468_v59 }
 0x59e   :  { %1390 = vmatpush3.bf16.msra.mxu0 %v1462_v41 }
 0x61e   :  { %v461_v7 = vpop.xlane.xlu1 %460 }
 0x61f   :  { %v471_v8 = vmul.f32 0.03125, %v461_v7 }
 0x621   :  { %v475_v9 = vadd.f32 1e-12, %v471_v8 }
 0x622   :  { %v464_v10 = vpop.xlane.xlu0 %463  ;;  %v467_v11 = vpop.xlane.xlu1 %466 }
 0x623   :  { %1485 = vrsqrt.f32 %v475_v9  ;;  %v472_v12 = vmul.f32 0.03125, %v464_v10  ;;  %v473_v13 = vmul.f32 0.03125, %v467_v11  ;;  %v1531_v10 = vmov 0  }
 0x624   :  { %1447 = vset.pattern.permute.xlu1 %v1531_v10  ;;  %1448 = vset.pattern.permute.xlu0 %v1531_v10  ;;  %v1463_v10 = vld [vmem:[%s1908_s18 + $0x18] sm:$0xff]  }
 0x625   :  { %v476_v14 = vadd.f32 1e-12, %v472_v12  ;;  %v477_v15 = vadd.f32 1e-12, %v473_v13 }
 0x626   :  { %v470_v16 = vpop.xlane.xlu0 %469 }
 0x627   :  { %1487 = vrsqrt.f32 %v476_v14  ;;  %v474_v17 = vmul.f32 0.03125, %v470_v16 }
 0x628   :  { %1489 = vrsqrt.f32 %v477_v15 }
 0x629   :  { %v478_v18 = vadd.f32 1e-12, %v474_v17 }
 0x62b   :  { %1491 = vrsqrt.f32 %v478_v18 }
 0x630   :  { %v1486_v19 = vpop.eup %1485 }
 0x631   :  { %v483_v20 = vmul.f32 %v1486_v19, %v451_v45 }
 0x633   :  { %v493_v25 = vmul.f32 %v1254_v21, %v483_v20 }
 0x634   :  { %v1488_v22 = vpop.eup %1487 }
 0x635   :  { %v1490_v23 = vpop.eup %1489  ;;  %v484_v24 = vmul.f32 %v1488_v22, %v452_v3  ;;  %v503_v31 = vadd.f32 %v1255_v27, %v493_v25 }
 0x636   :  { %v485_v26 = vmul.f32 %v1490_v23, %v453_v50 }
 0x637   :  { %v494_v28 = vmul.f32 %v1254_v21, %v484_v24 }
 0x638   :  { %v1492_v29 = vpop.eup %1491  ;;  %v495_v33 = vmul.f32 %v1254_v21, %v485_v26 }
 0x639   :  { %v486_v30 = vmul.f32 %v1492_v29, %v454_v55  ;;  %v504_v32 = vadd.f32 %v1255_v27, %v494_v28 }
 0x63a   :  { %v505_v36 = vadd.f32 %v1255_v27, %v495_v33  ;;  %v801_v33 = vld [vmem:[%s1905_s15] sm:$0xf] }
 0x63b   :  { %v507_v34 = vpack.c.bf16 %v504_v32, %v503_v31  ;;  %v496_v35 = vmul.f32 %v1254_v21, %v486_v30 }
 0x63d   :  { %1371 = vmatprep.mubr.msk.bf16.mxu1 %vm104_vm0, %v507_v34  ;;  %v506_v37 = vadd.f32 %v1255_v27, %v496_v35 }
 0x63f   :  { %v508_v38 = vpack.c.bf16 %v506_v37, %v505_v36 }
 0x641   :  { %1372 = vmatmul.mubr.msk.bf16.vlgmr.msra.gmra.mxu1 %vm104_vm0, %v508_v38 }
 0x701   :  { %v1373_v42 = vpop.f32.mrf.mxu1 }
 0x702   :  { %v581_v47 = vadd.f32 %v1373_v42, %v1256_v43 }
 0x703   :  { %v572_v2 = vpop.f32.mrf.mxu1 }
 0x704   :  { %v573_v45 = vadd.f32 %v1256_v43, %v572_v2  ;;  %v589_v51 = vmax.f32 %v581_v47, 0.0  ;;  %v1270_v47 = vld [vmem:[%s1902_s12] ss:$0 sm:$0xff] }
 0x705   :  { %v1374_v44 = vpop.f32.mrf.mxu1 }
 0x706   :  { %v584_v46 = vadd.f32 %v1374_v44, %v1256_v43  ;;  %v587_v3 = vmax.f32 %v573_v45, 0.0 }
 0x707   :  { %v575_v4 = vpop.f32.mrf.mxu1 }
 0x708   :  { %v576_v48 = vadd.f32 %v1256_v43, %v575_v4  ;;  %v590_v49 = vmax.f32 %v584_v46, 0.0  ;;  %v791_v4 = vlaneseq }
 0x70a   :  { %v588_v50 = vmax.f32 %v576_v48, 0.0  ;;  %v592_v6 = vpack.c.bf16 %v590_v49, %v589_v51  ;;  %v1271_v51 = vld [vmem:[%s1903_s13] ss:$0 sm:$0xff] }
 0x70c   :  { %v591_v52 = vpack.c.bf16 %v588_v50, %v587_v3 }
 0x70e   :  { %1391 = vmatprep.mubr.bf16.mxu0 %v591_v52  ;;  %v1818_v52 = vand.u32 127, %v791_v4 }
 0x70f   :  { %1392 = vmatmul.mubr.bf16.vlgmr.msra.gmra.mxu0 %v592_v6 }
 0x7cf   :  { %v1393_v54 = vpop.f32.mrf.mxu0 }
 0x7d0   :  { %v707_v55 = vadd.f32 %v1393_v54, %v1261_v53 }
 0x7d1   :  { %v698_v56 = vpop.f32.mrf.mxu0 }
 0x7d2   :  { %v699_v57 = vadd.f32 %v1261_v53, %v698_v56  ;;  %v715_v58 = vadd.f32 %v707_v55, %v505_v36 }
 0x7d3   :  { %v1394_v59 = vpop.f32.mrf.mxu0 }
 0x7d4   :  { %v710_v60 = vadd.f32 %v1394_v59, %v1261_v53  ;;  %v725_v61 = vsel %vm104_vm0, %v715_v58, 0.0  ;;  %v713_v62 = vadd.f32 %v699_v57, %v503_v31  ;;  %v793_v31 = vld [vmem:[%s1904_s14] sm:$0xf] }
 0x7d5   :  { %726 = vadd.xlane.f32.xlu1 %v725_v61  ;;  %v701_v63 = vpop.f32.mrf.mxu0 }
 0x7d6   :  { %v702_v0 = vadd.f32 %v1261_v53, %v701_v63  ;;  %v716_v1 = vadd.f32 %v710_v60, %v506_v37  ;;  %v719_v7 = vsel %vm104_vm0, %v713_v62, 0.0 }
 0x7d8   :  { %v728_v5 = vsel %vm104_vm0, %v716_v1, 0.0  ;;  %v714_v8 = vadd.f32 %v702_v0, %v504_v32  ;;  %v1532_v32 = vmov 0.0  }
 0x7d9   :  { %729 = vadd.xlane.f32.xlu0 %v728_v5  ;;  %720 = vadd.xlane.f32.xlu1 %v719_v7 }
 0x7da   :  { %v722_v9 = vsel %vm104_vm0, %v714_v8, 0.0  ;;  %1395 = vmatprep.subr.bf16.mxu1 %v1532_v32  ;;  %1423 = vmatprep.subr.bf16.mxu0 %v1532_v32 }
 0x7db   :  { %1399 = vmatprep.mubr.msk.bf16.mxu1 %vm1533_vm1, %v1532_v32  ;;  %1427 = vmatprep.mubr.msk.bf16.mxu0 %vm1533_vm1, %v1532_v32 }
 0x7dd   :  { %723 = vadd.xlane.f32.xlu0 %v722_v9 }
 0x85e   :  { %v727_v11 = vpop.xlane.xlu1 %726 }
 0x85f   :  { %v733_v12 = vmul.f32 0.03125, %v727_v11  ;;  %v1464_v11 = vld [vmem:[%s1908_s18 + $0x10] sm:$0xff]  }
 0x861   :  { %v737_v13 = vsub.f32 %v715_v58, %v733_v12  ;;  %v1465_v12 = vld [vmem:[%s1908_s18 + $0x8] sm:$0xff]  }
 0x862   :  { %v730_v14 = vpop.xlane.xlu0 %729  ;;  %v721_v15 = vpop.xlane.xlu1 %720 }
 0x863   :  { %v734_v16 = vmul.f32 0.03125, %v730_v14  ;;  %v731_v17 = vmul.f32 0.03125, %v721_v15  ;;  %v741_v18 = vmul.f32 %v737_v13, %v737_v13 }
 0x865   :  { %v738_v19 = vsub.f32 %v716_v1, %v734_v16  ;;  %v735_v20 = vsub.f32 %v713_v62, %v731_v17  ;;  %v749_v21 = vsel %vm104_vm0, %v741_v18, 0.0 }
 0x866   :  { %v724_v22 = vpop.xlane.xlu0 %723  ;;  %750 = vadd.xlane.f32.xlu1 %v749_v21 }
 0x867   :  { %v732_v23 = vmul.f32 0.03125, %v724_v22  ;;  %v742_v24 = vmul.f32 %v738_v19, %v738_v19  ;;  %v739_v25 = vmul.f32 %v735_v20, %v735_v20 }
 0x869   :  { %v736_v26 = vsub.f32 %v714_v8, %v732_v23  ;;  %v752_v27 = vsel %vm104_vm0, %v742_v24, 0.0  ;;  %v743_v28 = vsel %vm104_vm0, %v739_v25, 0.0  ;;  %v1467_v25 = vld [vmem:[%s1910_s20 + $0x8] sm:$0xff]  }
 0x86a   :  { %753 = vadd.xlane.f32.xlu0 %v752_v27  ;;  %744 = vadd.xlane.f32.xlu1 %v743_v28  ;;  %v1276_v27 = vld [vmem:[%s1909_s19] ss:$0 sm:$0xff] }
 0x86b   :  { %v740_v29 = vmul.f32 %v736_v26, %v736_v26  ;;  %1424 = vmatpush3.bf16.msra.mxu0 %v1467_v25 }
 0x86c   :  { %1425 = vmatprep.subr.bf16.mxu0 %v1532_v32 }
 0x86d   :  { %v746_v30 = vsel %vm104_vm0, %v740_v29, 0.0 }
 0x86e   :  { %747 = vadd.xlane.f32.xlu0 %v746_v30 }
 0x87b   :  { %795 = vperm.xlu1 %1447, %v793_v31  }
 0x884   :  { %803 = vperm.xlu0 %1448, %v801_v33  }
 0x8ef   :  { %v751_v34 = vpop.xlane.xlu1 %750 }
 0x8f0   :  { %v757_v35 = vmul.f32 0.03125, %v751_v34 }
 0x8f2   :  { %v761_v36 = vadd.f32 1e-12, %v757_v35 }
 0x8f3   :  { %v754_v37 = vpop.xlane.xlu0 %753  ;;  %v745_v38 = vpop.xlane.xlu1 %744 }
 0x8f4   :  { %1493 = vrsqrt.f32 %v761_v36  ;;  %v758_v39 = vmul.f32 0.03125, %v754_v37  ;;  %v755_v40 = vmul.f32 0.03125, %v745_v38  ;;  %v1282_v36 = vld [vmem:[%s1911_s21] ss:$0 sm:$0xff] }
 0x8f6   :  { %v762_v41 = vadd.f32 1e-12, %v758_v39  ;;  %v759_v42 = vadd.f32 1e-12, %v755_v40 }
 0x8f7   :  { %v748_v2 = vpop.xlane.xlu0 %747  ;;  %v796_v54 = vpop.permute.xlu1 %795 }
 0x8f8   :  { %1495 = vrsqrt.f32 %v762_v41  ;;  %v756_v43 = vmul.f32 0.03125, %v748_v2  ;;  %vm797_vm2 = vcmp.eq.s32.totalorder %v1818_v52, %v796_v54  ;;  %v1099_v2 = vcvt.s32.f32 %v1818_v52 }
 0x8f9   :  { %1497 = vrsqrt.f32 %v759_v42  ;;  %v1272_v62 = vsel %vm797_vm2, 1.0, %v1532_v32 }
 0x8fa   :  { %v760_v44 = vadd.f32 1e-12, %v756_v43  ;;  %v800_v7 = vpack.c.bf16 %v1272_v62, %v1272_v62 }
 0x8fc   :  { %1499 = vrsqrt.f32 %v760_v44 }
 0x8ff   :  { %v804_v5 = vpop.permute.xlu0 %803 }
 0x900   :  { %vm805_vm3 = vcmp.eq.s32.totalorder %v1818_v52, %v804_v5 }
 0x901   :  { %v1494_v45 = vpop.eup %1493  ;;  %v1273_v8 = vsel %vm805_vm3, 1.0, %v1532_v32 }
 0x902   :  { %v769_v46 = vmul.f32 %v1494_v45, %v737_v13  ;;  %v808_v9 = vpack.c.bf16 %v1273_v8, %v1273_v8  ;;  %v1466_v13 = vld [vmem:[%s1908_s18] sm:$0xff]  }
 0x904   :  { %v779_v50 = vmul.f32 %v1270_v47, %v769_v46  ;;  %v1068_v46 = vld [vmem:[%s1906_s16] sm:$0xf] }
 0x905   :  { %v1496_v48 = vpop.eup %1495 }
 0x906   :  { %v1498_v49 = vpop.eup %1497  ;;  %v770_v3 = vmul.f32 %v1496_v48, %v738_v19  ;;  %v789_v56 = vadd.f32 %v1271_v51, %v779_v50  ;;  %v1105_v50 = vshrl.u32 %v791_v4, 7  ;;  %v1054_v4 = vld [vmem:[%s1907_s17] sm:$0xf]  ;;  %s1535_s17 = smov [#allocation2]  }
 0x907   :  { %v767_v6 = vmul.f32 %v1498_v49, %v735_v20  ;;  %s1228_s11 = sshll.u32 %s1535_s17, 4  ;;  %s1229_s11 = int_to_ptr.vmem [resolvable:$true] %s1228_s11 }
 0x908   :  { %v780_v53 = vmul.f32 %v1270_v47, %v770_v3  ;;  %vm1106_vm8 = vcmp.eq.s32.totalorder %v1105_v50, %v1818_v52  ;;  %s1507_s25 = scalar_lea.vmem %s1229_s11, 16  ;;  %s1511_s5 = scalar_lea.vmem %s1229_s11, 32 }
 0x909   :  { %v1500_v55 = vpop.eup %1499  ;;  %v777_v59 = vmul.f32 %v1270_v47, %v767_v6  ;;  %p1508_p0 = scmp.ne.s32.totalorder %s1229_s11, %s1507_s25  ;;  %p1512_p1 = scmp.lt.s32.totalorder %s1229_s11, %s1229_s11 }
 0x90a   :  { %v790_v57 = vadd.f32 %v1271_v51, %v780_v53  ;;  %v768_v58 = vmul.f32 %v1500_v55, %v736_v26  ;;  %v1468_v26 = vld [vmem:[%s1910_s20] sm:$0xff]   ;;  %p1513_p2 = scmp.lt.s32.totalorder %s1511_s5, %s1507_s25 }
 0x90b   :  { %v787_v63 = vadd.f32 %v1271_v51, %v777_v59  ;;  %1426 = vmatpush3.bf16.msra.mxu0 %v1468_v26 }
 0x90c   :  { %v810_v60 = vpack.c.bf16 %v790_v57, %v789_v56  ;;  %v778_v61 = vmul.f32 %v1270_v47, %v768_v58  ;;  %p1514_p3 = por %p1513_p2, %p1512_p1 }
 0x90e   :  { %1396 = vmatpush3.bf16.msra.mxu1 %v810_v60  ;;  %v788_v0 = vadd.f32 %v1271_v51, %v778_v61  ;;  %v1286_v51 = vsel %vm1106_vm8, 1.0, %v1532_v32  ;;  %p1515_p4 = pnand %p1514_p3, %p1508_p0 }
 0x90f   :  { %1397 = vmatprep.subr.bf16.mxu1 %v1532_v32 }
 0x910   :  { %v809_v1 = vpack.c.bf16 %v788_v0, %v787_v63 }
 0x912   :  { %1398 = vmatpush3.bf16.msra.mxu1 %v809_v1 }
 0x913   :  { %1403 = vmatprep.subr.bf16.mxu1 %v1532_v32 }
 0x915   :  { %1400 = vmatmul.mubr.msk.bf16.vlgmr.msra.gmra.mxu1 %vm104_vm0, %v800_v7 }
 0x916   :  { %1404 = vmatpush3.bf16.msra.mxu1 %v810_v60  ;;  %1407 = vmatprep.mubr.msk.bf16.mxu1 %vm1533_vm1, %v1532_v32 }
 0x917   :  { %1405 = vmatprep.subr.bf16.mxu1 %v1532_v32 }
 0x91a   :  { %1406 = vmatpush3.bf16.msra.mxu1 %v809_v1 }
 0x91b   :  { %1411 = vmatprep.subr.bf16.mxu1 %v1532_v32 }
 0x91d   :  { %1408 = vmatmul.mubr.msk.bf16.vlgmr.msra.gmra.mxu1 %vm104_vm0, %v808_v9 }
 0x91e   :  { %1419 = vmatprep.mubr.msk.bf16.mxu1 %vm1533_vm1, %v1532_v32  ;;  %1412 = vmatpush3.bf16.msra.mxu1 %v1463_v10 }
 0x91f   :  { %1413 = vmatprep.subr.bf16.mxu1 %v1532_v32 }
 0x922   :  { %1414 = vmatpush3.bf16.msra.mxu1 %v1464_v11 }
 0x923   :  { %1415 = vmatprep.subr.bf16.mxu1 %v1532_v32 }
 0x926   :  { %1416 = vmatpush3.bf16.msra.mxu1 %v1465_v12 }
 0x927   :  { %1417 = vmatprep.subr.bf16.mxu1 %v1532_v32 }
 0x92a   :  { %1418 = vmatpush3.bf16.msra.mxu1 %v1466_v13 }
 0x92b   :  { %1431 = vmatprep.subr.mxu1 %v1532_v32 }
 0x9d5   :  { %v848_v14 = vpop.f32.mrf.mxu1 }
 0x9d7   :  { %v1401_v15 = vpop.f32.mrf.mxu1 }
 0x9d9   :  { %v851_v16 = vpop.f32.mrf.mxu1 }
 0x9db   :  { %v1402_v17 = vpop.f32.mrf.mxu1 }
 0x9dd   :  { %v891_v18 = vpop.f32.mrf.mxu1 }
 0x9de   :  { %898 = vrot.lane.b32.xlu1 %v891_v18, %s1534_s3 }
 0x9df   :  { %v1409_v19 = vpop.f32.mrf.mxu1 }
 0x9e1   :  { %v894_v20 = vpop.f32.mrf.mxu1 }
 0x9e3   :  { %v1410_v21 = vpop.f32.mrf.mxu1 }
 0xa50   :  { %v899_v22 = vpop.permute.xlu1 %898 }
 0xa51   :  { %v901_v23 = vsel %vm104_vm0, %v848_v14, %v899_v22 }
 0xa52   :  { %v902_v24 = vpack.c.bf16 %v901_v23, %v901_v23 }
 0xa54   :  { %1420 = vmatmul.mubr.msk.bf16.vlgmr.msra.gmra.mxu1 %vm942_vm4, %v902_v24 }
 0xa55   :  { %1433 = vmatprep.mubr.msk.f32.mxu1 %vm1533_vm1, %v1532_v32  ;;  %1432 = vmatpush3.msk.msra.mxu1 %vm1145_vm7, %v1286_v51  ;;  %v1087_v32 = vsel %vm1079_vm11, %v1054_v4, 0.0 }
 0xa56   :  { %v1088_v58 = vrot.slane %v1087_v32, 4 }
 0xa58   :  { %v1089_v59 = vadd.f32 %v1088_v58, %v1087_v32 }
 0xa5a   :  { %v1090_v60 = vrot.slane %v1089_v59, 2 }
 0xb14   :  { %v980_v28 = vpop.f32.mrf.mxu1 }
 0xb15   :  { %v981_v29 = vadd.f32 %v1276_v27, %v980_v28 }
 0xb16   :  { %v1421_v30 = vpop.f32.mrf.mxu1 }
 0xb17   :  { %v986_v31 = vmax.f32 %v981_v29, 0.0 }
 0xb18   :  { %v983_v33 = vpop.f32.mrf.mxu1 }
 0xb19   :  { %v987_v34 = vpack.c.bf16 %v986_v31, %v986_v31 }
 0xb1a   :  { %v1422_v35 = vpop.f32.mrf.mxu1 }
 0xb1b   :  { %1428 = vmatmul.mubr.msk.bf16.vlgmr.msra.gmra.mxu0 %vm104_vm0, %v987_v34 }
 0xbdb   :  { %v1048_v37 = vpop.f32.mrf.mxu0 }
 0xbdc   :  { %v1049_v38 = vadd.f32 %v1282_v36, %v1048_v37 }
 0xbdd   :  { %v1429_v39 = vpop.f32.mrf.mxu0 }
 0xbde   :  { %v1056_v40 = vsel %vm1055_vm5, %v1049_v38, -inf }
 0xbdf   :  { %1057 = vmax.xlane.f32.xlu1 %v1056_v40  ;;  %v1051_v41 = vpop.f32.mrf.mxu0 }
 0xbe1   :  { %v1430_v42 = vpop.f32.mrf.mxu0 }
 0xc68   :  { %v1058_v43 = vpop.xlane.xlu1 %1057 }
 0xc69   :  { %vm1098_vm6 = vcmp.eq.f32.partialorder %v1049_v38, %v1058_v43  ;;  %v1059_v47 = vsub.f32 %v1049_v38, %v1058_v43 }
 0xc6a   :  { %v1100_v44 = vsel %vm1098_vm6, %v1099_v2, 5.0 }
 0xc6b   :  { %v1101_v45 = vsel %vm1055_vm5, %v1100_v44, inf  ;;  %v1060_v48 = vmul.f32 1.442695, %v1059_v47 }
 0xc6c   :  { %1102 = vmin.xlane.f32.xlu0 %v1101_v45 }
 0xc6d   :  { %1501 = vpow2.f32 %v1060_v48 }
 0xc7a   :  { %v1502_v49 = vpop.eup %1501 }
 0xc7b   :  { %v1062_v3 = vsel %vm1055_vm5, %v1502_v49, 0.0 }
 0xc82   :  { %1070 = vperm.xlu0 %1448, %v1068_v46  }
 0xca1   :  { %1063 = vadd.xlane.f32.xlu0 %v1062_v3 }
 0xcf5   :  { %v1103_v6 = vpop.xlane.xlu0 %1102 }
 0xcf6   :  { %1109 = vxpose.xlu1.b32.start.end [1/1] (short) (narrow) %v1103_v6, 8 }
 0xcfd   :  { %v1071_v53 = vpop.permute.xlu0 %1070 }
 0xcfe   :  { %vm1072_vm9 = vcmp.eq.s32.totalorder %v1818_v52, %v1071_v53  ;;  %v1091_v52 = vadd.f32 %v1090_v60, %v1089_v59 }
 0xcff   :  { %v1073_v54 = vsel %vm1072_vm9, %v1049_v38, 0.0 }
 0xd00   :  { %v1074_v55 = vsel %vm1055_vm5, %v1073_v54, 0.0  ;;  %v1092_v62 = vrot.slane %v1091_v52, 1 }
 0xd02   :  { %v1093_v0 = vadd.f32 %v1092_v62, %v1091_v52 }
 0xd1d   :  { %1075 = vadd.xlane.f32.xlu1 %v1074_v55 }
 0xd2a   :  { %v1064_v57 = vpop.xlane.xlu0 %1063 }
 0xd2b   :  { %1503 = vlog2.f32 %v1064_v57 }
 0xd2c   :  { %1505 = vrcp.f32 %v1093_v0 }
 0xd38   :  { %v1504_v61 = vpop.eup %1503 }
 0xd39   :  { %v1066_v63 = vmul.f32 0.6931472, %v1504_v61  ;;  %v1506_v15 = vpop.eup %1505 }
 0xd3b   :  { %v1067_v1 = vadd.f32 %v1066_v63, %v1058_v43 }
 0xd72   :  { %v1125_v56 = vpop.trf.xlu1 }
 0xd73   :  { %1434 = vmatmul.mubr.msk.f32.vlgmr.msra.gmra.mxu1 %vm1141_vm10, %v1125_v56 }
 0xda6   :  { %v1076_v5 = vpop.xlane.xlu1 %1075 }
 0xda7   :  { %v1077_v7 = vsub.f32 %v1067_v1, %v1076_v5 }
 0xda9   :  { %v1078_v8 = vmul.f32 %v1077_v7, %v1054_v4 }
 0xdab   :  { %v1080_v9 = vsel %vm1079_vm11, %v1078_v8, 0.0 }
 0xdac   :  { %v1081_v10 = vrot.slane %v1080_v9, 4 }
 0xdae   :  { %v1082_v11 = vadd.f32 %v1081_v10, %v1080_v9 }
 0xdb0   :  { %v1083_v12 = vrot.slane %v1082_v11, 2 }
 0xdb2   :  { %v1084_v13 = vadd.f32 %v1083_v12, %v1082_v11 }
 0xdb4   :  { %v1085_v14 = vrot.slane %v1084_v13, 1 }
 0xdb6   :  { %v1086_v16 = vadd.f32 %v1085_v14, %v1084_v13 }
 0xdb8   :  { %v1095_v17 = vmul.f32 %v1506_v15, %v1086_v16 }
 0xdba   :  { %1097 = vst.msk [vmem:[#allocation2] sm:$0x1] %vm1096_vm12, %v1095_v17 }
 0xdbb   :  { %1518 = shalt.err (!%p1515_p4)
}
 0xdbc   :  { %1231 = dma.vmem_to_hbm [thread:$0]  %s1229_s11, 16, %s1912_s22, [#allocation3]   ;;  %vm1220_vm13 = vcmask 24576  }
 0xe33   :  { %v1215_v18 = vpop.f32.mrf.mxu1 }
 0xe34   :  { %v1438_v19 = vtrunc.f32 %v1215_v18 }
 0xe35   :  { %v1435_v20 = vpop.f32.mrf.mxu1 }
 0xe36   :  { %v1439_v21 = vcvt.f32.s32 %v1438_v19 }
 0xe38   :  { %1221 = vst.msk [vmem:[%s1913_s23] sm:$0x1] %vm1220_vm13, %v1439_v21 }
 0xe39   :  { %1527 = dma.done.wait [#allocation3], 16  }
 0xe3a   :  { %1528 = vsyncadd [#allocation3], 4294967280 }
 0xe3b   :  { %1239 = vsyncpa [#allocation3], 1 }

</bundles_post_ra>
